<compile_context>
chip_gen: v6e
topology: v6e:2x2x1
jax: 0.10.0
libtpu: 0.0.40
codegen_flags: <defaults>
</compile_context>

<pallas_src>
import functools
import math

import jax
import jax.numpy as jnp
from jax.experimental import pallas as pl
from jax.experimental.pallas import tpu as pltpu


def _round_up(x, m):
    return ((x + m - 1) // m) * m


def _mlp_kernel(negative_slope, num_hidden, x_ref, *refs):
    """Fused MLP tile: (Linear -> LeakyReLU) * num_hidden -> Linear(out=1).

    refs = (w0, b0, w1, b1, ..., wf_rows, bf, out_ref)
    x_ref:   (tile_n, pacdim)        f32  (cast to bf16 in-kernel)
    w_i:     (in_pad, out_pad)       bf16 (VMEM-resident, constant index_map)
    b_i:     (1, out_pad)            f32
    wf_rows: (8, in_pad)             bf16 (row 0 = final weight column)
    bf:      (1, 1)                  f32
    out_ref: (1, tile_n)             f32  (lane-dense row of critic scores)
    """
    out_ref = refs[-1]
    params = refs[:-1]

    h = x_ref[...].astype(jnp.bfloat16)
    for i in range(num_hidden):
        w = params[2 * i][...]                       # bf16
        b = params[2 * i + 1][...]                   # f32 (1, H) -> broadcasts
        z = jnp.dot(h, w, preferred_element_type=jnp.float32) + b
        # LeakyReLU(negative_slope) in f32.
        z = jnp.where(z >= 0, z, negative_slope * z)
        h = z.astype(jnp.bfloat16)
        # Dropout(0.5): identity at inference.
        # TODO(synk): training-mode stochastic dropout not implemented here.

    wf_rows = params[-2][...]                        # (8, K) bf16
    bf = params[-1][...]                             # (1, 1) f32
    # out[0, n] = sum_k wf_rows[0, k] * h[n, k]  -> lane-dense (1, tile_n) row.
    res = jax.lax.dot_general(
        wf_rows, h,
        dimension_numbers=(((1,), (1,)), ((), ())),
        preferred_element_type=jnp.float32)          # (8, tile_n) f32
    out_ref[...] = res[0:1, :] + bf


def discriminator_forward(x, weights, biases, *, pac, negative_slope,
                          tile_n_max=2048):
    """JAX wrapper: reshape to pac'ed rows and run the tiled Pallas MLP kernel.

    x:       (B, input_dim) f32, B % pac == 0
    weights: list of (in, out) f32 matrices; last one has out == 1
    biases:  list of (out,) f32 vectors
    returns: (B // pac, 1) float32
    """
    B, input_dim = x.shape
    assert B % pac == 0, "batch must be divisible by pac"
    N = B // pac
    pacdim = input_dim * pac
    xr = x.reshape(N, pacdim)                        # free reshape, stays f32

    num_hidden = len(weights) - 1

    # Padded input width of each layer: layer 0 keeps raw pacdim (no x padding
    # copy); subsequent inputs are the previous layer's 128-padded output.
    in_pad = [pacdim]
    for w in weights[:-1]:
        in_pad.append(_round_up(w.shape[1], 128))

    # Row tile: multiple of 128.  Default 2048 is v5e-safe; v6e ~4096, v7x up
    # to 8192 (keep >= 2 grid steps so both TensorCores get work).
    vmem_row_budget = 12 * 1024 * 1024               # per (double-)buffer of x
    cap = max(128, (vmem_row_budget // (pacdim * 4)) // 128 * 128)
    tile_n = max(128, min(_round_up(N, 128), _round_up(tile_n_max, 128), cap))
    num_tiles = pl.cdiv(N, tile_n)                   # no row padding of x;
    # the last (partial) tile reads undefined rows whose outputs are sliced
    # off below -- safe because the MLP has no cross-row mixing.

    args = [xr]
    in_specs = [pl.BlockSpec((tile_n, pacdim), lambda i: (i, 0))]

    for li in range(num_hidden):
        w, b = weights[li], biases[li]
        in_d, out_d = w.shape
        in_p, out_p = in_pad[li], _round_up(out_d, 128)
        w_p = jnp.zeros((in_p, out_p), jnp.bfloat16)
        w_p = w_p.at[:in_d, :out_d].set(w.astype(jnp.bfloat16))
        b_p = jnp.zeros((1, out_p), jnp.float32)
        b_p = b_p.at[0, :out_d].set(b.astype(jnp.float32))
        args += [w_p, b_p]
        # Constant index_map -> DMA'd once, resident in VMEM.
        in_specs += [pl.BlockSpec((in_p, out_p), lambda i: (0, 0)),
                     pl.BlockSpec((1, out_p), lambda i: (0, 0))]

    # Final Linear(dim, 1): its single weight column is stored as row 0 of an
    # (8, in_p) slab so the kernel emits a lane-dense (1, tile_n) output.
    w_last, b_last = weights[-1], biases[-1]
    in_d = w_last.shape[0]
    in_p = in_pad[num_hidden]
    wf_rows = jnp.zeros((8, in_p), jnp.bfloat16)
    wf_rows = wf_rows.at[0, :in_d].set(w_last[:, 0].astype(jnp.bfloat16))
    bf = b_last.astype(jnp.float32).reshape(1, 1)
    args += [wf_rows, bf]
    in_specs += [pl.BlockSpec((8, in_p), lambda i: (0, 0)),
                 pl.BlockSpec((1, 1), lambda i: (0, 0))]

    kernel = functools.partial(_mlp_kernel, float(negative_slope), num_hidden)

    flops = 2 * N * sum(int(w.shape[0]) * int(w.shape[1]) for w in weights)
    bytes_accessed = (N * pacdim * 4 + num_tiles * tile_n * 4 +
                      sum(int(a.size) * a.dtype.itemsize for a in args[1:]))
    cost = pl.CostEstimate(flops=flops, transcendentals=0,
                           bytes_accessed=bytes_accessed)

    out = pl.pallas_call(
        kernel,
        out_shape=jax.ShapeDtypeStruct((num_tiles, tile_n), jnp.float32),
        grid=(num_tiles,),
        in_specs=in_specs,
        out_specs=pl.BlockSpec((1, tile_n), lambda i: (i, 0)),
        compiler_params=pltpu.CompilerParams(
            dimension_semantics=("parallel",),
            vmem_limit_bytes=48 * 1024 * 1024),
        cost_estimate=cost,
    )(*args)

    # (num_tiles, tile_n) row-major flatten == batch order; drop padded rows.
    return out.reshape(-1)[:N].reshape(N, 1)


def init_discriminator_params(key, input_dim, discriminator_dim, pac):
    """Deterministic xavier_normal weights / zero biases (matches init_weights)."""
    dims = [input_dim * pac] + list(discriminator_dim) + [1]
    weights, biases = [], []
    for i in range(len(dims) - 1):
        fan_in, fan_out = dims[i], dims[i + 1]
        key, sub = jax.random.split(key)
        std = math.sqrt(2.0 / (fan_in + fan_out))    # xavier_normal_, gain=1
        w = std * jax.random.normal(sub, (fan_in, fan_out), dtype=jnp.float32)
        b = jnp.zeros((fan_out,), dtype=jnp.float32)
        weights.append(w)
        biases.append(b)
    return weights, biases


def _reference_forward(x, weights, biases, *, pac, negative_slope):
    """Pure-JAX f32 reference for correctness checking."""
    N = x.shape[0] // pac
    h = x.reshape(N, -1).astype(jnp.float32)
    for i in range(len(weights) - 1):
        h = h @ weights[i] + biases[i]
        h = jnp.where(h >= 0, h, negative_slope * h)
    return h @ weights[-1] + biases[-1]


if __name__ == "__main__":
    # Small, module-consistent shapes.
    input_dim = 8
    discriminator_dim = (32, 32)
    negative_slope = 0.2
    pac = 10
    batch = 20                       # batch % pac == 0  ->  2 pac'ed rows

    key = jax.random.PRNGKey(0)
    key, kx, kp = jax.random.split(key, 3)
    x = jax.random.normal(kx, (batch, input_dim), dtype=jnp.float32)
    weights, biases = init_discriminator_params(kp, input_dim,
                                                discriminator_dim, pac)

    out = discriminator_forward(x, weights, biases, pac=pac,
                                negative_slope=negative_slope)
    out = jax.block_until_ready(out)

    ref = _reference_forward(x, weights, biases, pac=pac,
                             negative_slope=negative_slope)
    assert out.shape == (batch // pac, 1)
    # bf16 weights/activations with f32 accumulation -> loosened tolerance.
    assert jnp.allclose(out, ref, atol=3e-2, rtol=3e-2), (out, ref)

    print("KERNEL_OK")
</pallas_src>

<mosaic_0001>
module attributes {stable_mosaic.version = 11 : i64} {
  func.func @_mlp_kernel(%arg0: i32, %arg1: memref<128x80xf32, #tpu.memory_space<vmem>>, %arg2: memref<80x128xbf16, #tpu.memory_space<vmem>>, %arg3: memref<1x128xf32, #tpu.memory_space<vmem>>, %arg4: memref<128x128xbf16, #tpu.memory_space<vmem>>, %arg5: memref<1x128xf32, #tpu.memory_space<vmem>>, %arg6: memref<8x128xbf16, #tpu.memory_space<vmem>>, %arg7: memref<1x1xf32, #tpu.memory_space<vmem>>, %arg8: memref<1x128xf32, #tpu.memory_space<vmem>>) attributes {dimension_semantics = [#tpu.dimension_semantics<parallel>], iteration_bounds = array<i64: 1>, scalar_prefetch = 0 : i64, scratch_operands = 0 : i64, tpu.core_type = #tpu.core_type<tc>, window_params = [{transform_indices = @transform_0, window_bounds = array<i64: 128, 80>}, {pipeline_mode = #tpu.pipeline_mode<synchronous>, transform_indices = @transform_1, window_bounds = array<i64: 80, 128>}, {pipeline_mode = #tpu.pipeline_mode<synchronous>, transform_indices = @transform_2, window_bounds = array<i64: 1, 128>}, {pipeline_mode = #tpu.pipeline_mode<synchronous>, transform_indices = @transform_3, window_bounds = array<i64: 128, 128>}, {pipeline_mode = #tpu.pipeline_mode<synchronous>, transform_indices = @transform_4, window_bounds = array<i64: 1, 128>}, {pipeline_mode = #tpu.pipeline_mode<synchronous>, transform_indices = @transform_5, window_bounds = array<i64: 8, 128>}, {pipeline_mode = #tpu.pipeline_mode<synchronous>, transform_indices = @transform_6, window_bounds = array<i64: 1, 1>}, {transform_indices = @transform_7, window_bounds = array<i64: 1, 128>}]} {
    %c0 = arith.constant 0 : index
    %c0_0 = arith.constant 0 : index
    %0 = vector.load %arg1[%c0, %c0_0] : memref<128x80xf32, #tpu.memory_space<vmem>>, vector<128x80xf32>
    %1 = arith.truncf %0 : vector<128x80xf32> to vector<128x80xbf16>
    %c0_1 = arith.constant 0 : index
    %c0_2 = arith.constant 0 : index
    %2 = vector.load %arg2[%c0_1, %c0_2] : memref<80x128xbf16, #tpu.memory_space<vmem>>, vector<80x128xbf16>
    %c0_3 = arith.constant 0 : index
    %c0_4 = arith.constant 0 : index
    %3 = vector.load %arg3[%c0_3, %c0_4] : memref<1x128xf32, #tpu.memory_space<vmem>>, vector<1x128xf32>
    %cst = arith.constant dense<0.000000e+00> : vector<128x128xf32>
    %4 = tpu.matmul %1, %2, %cst {dimension_numbers = #tpu.dot_dimension_numbers<[1], [0], [0], [1], [0, 0, 1, 1], [], []>} : vector<128x80xbf16>, vector<80x128xbf16>, vector<128x128xf32> -> vector<128x128xf32>
    %5 = vector.broadcast %3 : vector<1x128xf32> to vector<128x128xf32>
    %6 = arith.addf %4, %5 : vector<128x128xf32>
    %cst_5 = arith.constant 0.000000e+00 : f32
    %7 = vector.broadcast %cst_5 : f32 to vector<128x128xf32>
    %8 = arith.cmpf oge, %6, %7 : vector<128x128xf32>
    %cst_6 = arith.constant 2.000000e-01 : f32
    %9 = vector.broadcast %cst_6 : f32 to vector<128x128xf32>
    %10 = arith.mulf %9, %6 : vector<128x128xf32>
    %11 = arith.select %8, %6, %10 : vector<128x128xi1>, vector<128x128xf32>
    %12 = arith.truncf %11 : vector<128x128xf32> to vector<128x128xbf16>
    %c0_7 = arith.constant 0 : index
    %c0_8 = arith.constant 0 : index
    %13 = vector.load %arg4[%c0_7, %c0_8] : memref<128x128xbf16, #tpu.memory_space<vmem>>, vector<128x128xbf16>
    %c0_9 = arith.constant 0 : index
    %c0_10 = arith.constant 0 : index
    %14 = vector.load %arg5[%c0_9, %c0_10] : memref<1x128xf32, #tpu.memory_space<vmem>>, vector<1x128xf32>
    %cst_11 = arith.constant dense<0.000000e+00> : vector<128x128xf32>
    %15 = tpu.matmul %12, %13, %cst_11 {dimension_numbers = #tpu.dot_dimension_numbers<[1], [0], [0], [1], [0, 0, 1, 1], [], []>} : vector<128x128xbf16>, vector<128x128xbf16>, vector<128x128xf32> -> vector<128x128xf32>
    %16 = vector.broadcast %14 : vector<1x128xf32> to vector<128x128xf32>
    %17 = arith.addf %15, %16 : vector<128x128xf32>
    %cst_12 = arith.constant 0.000000e+00 : f32
    %18 = vector.broadcast %cst_12 : f32 to vector<128x128xf32>
    %19 = arith.cmpf oge, %17, %18 : vector<128x128xf32>
    %cst_13 = arith.constant 2.000000e-01 : f32
    %20 = vector.broadcast %cst_13 : f32 to vector<128x128xf32>
    %21 = arith.mulf %20, %17 : vector<128x128xf32>
    %22 = arith.select %19, %17, %21 : vector<128x128xi1>, vector<128x128xf32>
    %23 = arith.truncf %22 : vector<128x128xf32> to vector<128x128xbf16>
    %c0_14 = arith.constant 0 : index
    %c0_15 = arith.constant 0 : index
    %24 = vector.load %arg6[%c0_14, %c0_15] : memref<8x128xbf16, #tpu.memory_space<vmem>>, vector<8x128xbf16>
    %c0_16 = arith.constant 0 : index
    %c0_17 = arith.constant 0 : index
    %25 = vector.load %arg7[%c0_16, %c0_17] : memref<1x1xf32, #tpu.memory_space<vmem>>, vector<1x1xf32>
    %cst_18 = arith.constant dense<0.000000e+00> : vector<8x128xf32>
    %26 = tpu.matmul %24, %23, %cst_18 {dimension_numbers = #tpu.dot_dimension_numbers<[1], [1], [0], [0], [0, 0, 1, 0], [], []>} : vector<8x128xbf16>, vector<128x128xbf16>, vector<8x128xf32> -> vector<8x128xf32>
    %27 = vector.extract_strided_slice %26 {offsets = [0, 0], sizes = [1, 128], strides = [1, 1]} : vector<8x128xf32> to vector<1x128xf32>
    %28 = vector.broadcast %25 : vector<1x1xf32> to vector<1x128xf32>
    %29 = arith.addf %27, %28 : vector<1x128xf32>
    %c0_19 = arith.constant 0 : index
    %c0_20 = arith.constant 0 : index
    %30 = vector.load %arg8[%c0_19, %c0_20] : memref<1x128xf32, #tpu.memory_space<vmem>>, vector<1x128xf32>
    tpu.vector_store %arg8[%c0_19, %c0_20], %29 {strides = array<i32>} : memref<1x128xf32, #tpu.memory_space<vmem>>, vector<1x128xf32>,
    return
  }
  func.func @transform_0(%arg0: i32) -> (i32, i32) {
    %c0_i32 = arith.constant 0 : i32
    %c0_i32_0 = arith.constant 0 : i32
    return %arg0, %c0_i32 : i32, i32
  }
  func.func @transform_1(%arg0: i32) -> (i32, i32) {
    %c0_i32 = arith.constant 0 : i32
    %c0_i32_0 = arith.constant 0 : i32
    %c0_i32_1 = arith.constant 0 : i32
    return %c0_i32, %c0_i32_0 : i32, i32
  }
  func.func @transform_2(%arg0: i32) -> (i32, i32) {
    %c0_i32 = arith.constant 0 : i32
    %c0_i32_0 = arith.constant 0 : i32
    %c0_i32_1 = arith.constant 0 : i32
    return %c0_i32, %c0_i32_0 : i32, i32
  }
  func.func @transform_3(%arg0: i32) -> (i32, i32) {
    %c0_i32 = arith.constant 0 : i32
    %c0_i32_0 = arith.constant 0 : i32
    %c0_i32_1 = arith.constant 0 : i32
    return %c0_i32, %c0_i32_0 : i32, i32
  }
  func.func @transform_4(%arg0: i32) -> (i32, i32) {
    %c0_i32 = arith.constant 0 : i32
    %c0_i32_0 = arith.constant 0 : i32
    %c0_i32_1 = arith.constant 0 : i32
    return %c0_i32, %c0_i32_0 : i32, i32
  }
  func.func @transform_5(%arg0: i32) -> (i32, i32) {
    %c0_i32 = arith.constant 0 : i32
    %c0_i32_0 = arith.constant 0 : i32
    %c0_i32_1 = arith.constant 0 : i32
    return %c0_i32, %c0_i32_0 : i32, i32
  }
  func.func @transform_6(%arg0: i32) -> (i32, i32) {
    %c0_i32 = arith.constant 0 : i32
    %c0_i32_0 = arith.constant 0 : i32
    %c0_i32_1 = arith.constant 0 : i32
    return %c0_i32, %c0_i32_0 : i32, i32
  }
  func.func @transform_7(%arg0: i32) -> (i32, i32) {
    %c0_i32 = arith.constant 0 : i32
    %c0_i32_0 = arith.constant 0 : i32
    return %arg0, %c0_i32 : i32, i32
  }
}

</mosaic_0001>

<bundles_post_ra>
// kernel: tpu_custom_call.1
= control target key start
LH: loop header
LB: loop body
LE: loop exit
PB: predicated region body
PF: predicated region fallthrough
CT: control target
= control target key end

     0   :  { %s1018_s0 = inlined_call_operand.vmem [shape: f32[2,80], index: 0, kind: input, shape index: {}]   ;;  %s1019_s1 = inlined_call_operand.hbm [shape: bf16[80,128], index: 1, kind: input, shape index: {}]   ;;  %s1020_s2 = inlined_call_operand.vmem [shape: f32[1,128], index: 2, kind: input, shape index: {}]   ;;  %s1021_s3 = inlined_call_operand.hbm [shape: bf16[128,128], index: 3, kind: input, shape index: {}]   ;;  %s1022_s4 = inlined_call_operand.vmem [shape: f32[1,128], index: 4, kind: input, shape index: {}]   ;;  %s1023_s5 = inlined_call_operand.vmem [shape: bf16[8,128], index: 5, kind: input, shape index: {}]   ;;  %s1024_s6 = inlined_call_operand.<no memory space> [shape: f32[1,1], index: 6, kind: input, shape index: {}]   ;;  %s1025_s7 = inlined_call_operand.hbm [shape: f32[1,128], index: 7, kind: output, shape index: {}]  }
   0x1   :  { %v12_v0 = vstv %s1024_s6 }
   0x2   :  { %13 = vst [vmem:[#allocation2] sm:$0x1] %v12_v0 }
   0x3   :  { %14 = vsyncpa [#allocation4], 0 }
   0x4   :  { %15 = vsyncpa [#allocation7], 0 }
   0x5   :  { %16 = vsyncpa [#allocation5], 0  ;;  %s827_s26 = smov [#allocation3]  }
   0x6   :  { %s24_s27 = sshll.u32 %s827_s26, 4  ;;  %s25_s27 = int_to_ptr.vmem [resolvable:$true] %s24_s27 }
   0x7   :  { %s769_s28 = scalar_lea.vmem %s25_s27, 640  ;;  %p774_p1 = scmp.lt.s32.totalorder %s25_s27, %s25_s27 }
   0x8   :  { %p770_p0 = scmp.ne.s32.totalorder %s25_s27, %s769_s28  ;;  %p775_p2 = scmp.lt.s32.totalorder %s769_s28, %s769_s28 }
   0xa   :  { %p776_p3 = por %p775_p2, %p774_p1 }
   0xc   :  { %p777_p4 = pnand %p776_p3, %p770_p0 }
   0xe   :  { %780 = shalt.err (!%p777_p4)
}
   0xf   :  { %s828_s29 = smov 64   ;;  %s829_s30 = smov 4  }
  0x10   :  { %30 = dma.hbm_to_vmem [thread:$0]  %s1019_s1, 640, %s25_s27, [#allocation4], %s828_s29, %s828_s29, %s829_s30  }
  0x11   :  { %s830_s6 = smov [#allocation6]  }
  0x12   :  { %s38_s10 = sshll.u32 %s830_s6, 4  ;;  %s39_s10 = int_to_ptr.vmem [resolvable:$true] %s38_s10 }
  0x13   :  { %s789_s11 = scalar_lea.vmem %s39_s10, 1024  ;;  %p794_p6 = scmp.lt.s32.totalorder %s39_s10, %s39_s10 }
  0x14   :  { %p790_p5 = scmp.ne.s32.totalorder %s39_s10, %s789_s11  ;;  %p795_p7 = scmp.lt.s32.totalorder %s789_s11, %s789_s11 }
  0x16   :  { %p796_p8 = por %p795_p7, %p794_p6 }
  0x18   :  { %p797_p9 = pnand %p796_p8, %p790_p5 }
  0x1a   :  { %800 = shalt.err (!%p797_p9)
}
  0x1b   :  { %44 = dma.hbm_to_vmem [thread:$0]  %s1021_s3, 1024, %s39_s10, [#allocation7], %s828_s29, %s828_s29, %s829_s30  }
  0x1c   :  { %821 = dma.done.wait [#allocation4], 640  }
  0x1d   :  { %822 = vsyncadd [#allocation4], 4294966656 }
  0x1e   :  { %823 = dma.done.wait [#allocation7], 1024  }
  0x1f   :  { %824 = vsyncadd [#allocation7], 4294966272  ;;  %v748_v1 = vld [vmem:[#allocation3 + $0x20] sm:$0xff]   ;;  %v749_v2 = vld [vmem:[#allocation3 + $0x18] sm:$0xff]   ;;  %vm129_vm0 = vcmask 654336   ;;  %s834_s21 = smov [#allocation8]  }
  0x20   :  { %661 = vmatprep.subr.bf16.mxu1 %v748_v1  ;;  %v750_v3 = vld [vmem:[#allocation3 + $0x10] sm:$0xff]   ;;  %v58_v4 = vld [vmem:[%s1018_s0] sm:$0xff]  ;;  %v59_v5 = vld [vmem:[%s1018_s0 + $0x8] sm:$0xff]  ;;  %s590_s22 = sshll.u32 %s834_s21, 4  ;;  %s591_s22 = int_to_ptr.vmem [resolvable:$true] %s590_s22 }
  0x21   :  { %662 = vmatpush3.bf16.msra.mxu1 %v748_v1  ;;  %v74_v6 = vpack.c.bf16 %v59_v5, %v58_v4  ;;  %v751_v7 = vld [vmem:[#allocation3 + $0x8] sm:$0xff]   ;;  %v752_v8 = vld [vmem:[#allocation3] sm:$0xff]   ;;  %v61_v10 = vld [vmem:[%s1018_s0 + $0x18] sm:$0xff]  ;;  %s801_s23 = scalar_lea.vmem %s591_s22, 16  ;;  %s805_s24 = scalar_lea.vmem %s591_s22, 32 }
  0x22   :  { %663 = vmatprep.subr.bf16.mxu1 %v749_v2  ;;  %v60_v9 = vld [vmem:[%s1018_s0 + $0x10] sm:$0xff]  ;;  %v62_v11 = vld [vmem:[%s1018_s0 + $0x20] sm:$0xff]  ;;  %v63_v12 = vld [vmem:[%s1018_s0 + $0x28] sm:$0xff]  ;;  %p802_p10 = scmp.ne.s32.totalorder %s591_s22, %s801_s23  ;;  %p806_p11 = scmp.lt.s32.totalorder %s591_s22, %s591_s22 }
  0x23   :  { %671 = vmatprep.mubr.msk.bf16.mxu1 %vm129_vm0, %v74_v6  ;;  %v753_v13 = vld [vmem:[#allocation6 + $0x38] sm:$0xff]   ;;  %v75_v14 = vpack.c.bf16 %v61_v10, %v60_v9  ;;  %v76_v15 = vpack.c.bf16 %v63_v12, %v62_v11  ;;  %v754_v16 = vld [vmem:[#allocation6 + $0x30] sm:$0xff]   ;;  %v64_v17 = vld [vmem:[%s1018_s0 + $0x30] sm:$0xff]  ;;  %p807_p12 = scmp.lt.s32.totalorder %s805_s24, %s801_s23 }
  0x24   :  { %v65_v18 = vld [vmem:[%s1018_s0 + $0x38] sm:$0xff]  ;;  %v66_v19 = vld [vmem:[%s1018_s0 + $0x40] sm:$0xff]  ;;  %v67_v20 = vld [vmem:[%s1018_s0 + $0x48] sm:$0xff] }
  0x25   :  { %664 = vmatpush3.bf16.msra.mxu1 %v749_v2  ;;  %v755_v21 = vld [vmem:[#allocation6 + $0x28] sm:$0xff]   ;;  %v77_v22 = vpack.c.bf16 %v65_v18, %v64_v17  ;;  %v78_v23 = vpack.c.bf16 %v67_v20, %v66_v19  ;;  %v756_v24 = vld [vmem:[#allocation6 + $0x20] sm:$0xff]   ;;  %v70_v27 = vld [vmem:[%s1018_s0 + $0x60] sm:$0xff]  ;;  %p808_p13 = por %p807_p12, %p806_p11 }
  0x26   :  { %665 = vmatprep.subr.bf16.mxu1 %v750_v3  ;;  %v68_v25 = vld [vmem:[%s1018_s0 + $0x50] sm:$0xff]  ;;  %v69_v26 = vld [vmem:[%s1018_s0 + $0x58] sm:$0xff]  ;;  %v71_v28 = vld [vmem:[%s1018_s0 + $0x68] sm:$0xff] }
  0x27   :  { %v757_v29 = vld [vmem:[#allocation6 + $0x18] sm:$0xff]   ;;  %v79_v30 = vpack.c.bf16 %v69_v26, %v68_v25  ;;  %v80_v31 = vpack.c.bf16 %v71_v28, %v70_v27  ;;  %v72_v32 = vld [vmem:[%s1018_s0 + $0x70] sm:$0xff]  ;;  %v73_v33 = vld [vmem:[%s1018_s0 + $0x78] sm:$0xff]  ;;  %p809_p0 = pnand %p808_p13, %p802_p10 }
  0x28   :  { %v81_v34 = vpack.c.bf16 %v73_v33, %v72_v32  ;;  %v758_v35 = vld [vmem:[#allocation6 + $0x10] sm:$0xff]   ;;  %v759_v36 = vld [vmem:[#allocation6 + $0x8] sm:$0xff]   ;;  %v760_v37 = vld [vmem:[#allocation6] sm:$0xff]  }
  0x29   :  { %666 = vmatpush3.bf16.msra.mxu1 %v750_v3  ;;  %v943_v39 = vld [vmem:[%s1020_s2] ss:$0 sm:$0xff] }
  0x2a   :  { %667 = vmatprep.subr.bf16.mxu1 %v751_v7 }
  0x2d   :  { %668 = vmatpush3.bf16.msra.mxu1 %v751_v7 }
  0x2e   :  { %669 = vmatprep.subr.bf16.mxu1 %v752_v8 }
  0x31   :  { %670 = vmatpush3.bf16.msra.mxu1 %v752_v8 }
  0x32   :  { %687 = vmatprep.subr.bf16.mxu1 %v753_v13 }
  0x34   :  { %672 = vmatmul.mubr.msk.bf16.vlgmr.msra.gmra.mxu1 %vm129_vm0, %v75_v14 }
  0x35   :  { %675 = vmatprep.mubr.msk.bf16.mxu1 %vm129_vm0, %v76_v15  ;;  %688 = vmatpush3.bf16.msra.mxu1 %v753_v13 }
  0x36   :  { %689 = vmatprep.subr.bf16.mxu1 %v754_v16 }
  0x39   :  { %690 = vmatpush3.bf16.msra.mxu1 %v754_v16 }
  0x3a   :  { %691 = vmatprep.subr.bf16.mxu1 %v755_v21 }
  0x3c   :  { %676 = vmatmul.mubr.msk.bf16.gmra.mxu1 %vm129_vm0, %v77_v22 }
  0x3d   :  { %679 = vmatprep.mubr.msk.bf16.mxu1 %vm129_vm0, %v78_v23  ;;  %692 = vmatpush3.bf16.msra.mxu1 %v755_v21 }
  0x3e   :  { %693 = vmatprep.subr.bf16.mxu1 %v756_v24 }
  0x41   :  { %694 = vmatpush3.bf16.msra.mxu1 %v756_v24 }
  0x42   :  { %695 = vmatprep.subr.bf16.mxu1 %v757_v29 }
  0x44   :  { %680 = vmatmul.mubr.msk.bf16.gmra.mxu1 %vm129_vm0, %v79_v30 }
  0x45   :  { %683 = vmatprep.mubr.msk.bf16.mxu1 %vm129_vm0, %v80_v31  ;;  %696 = vmatpush3.bf16.msra.mxu1 %v757_v29 }
  0x46   :  { %697 = vmatprep.subr.bf16.mxu1 %v758_v35 }
  0x49   :  { %698 = vmatpush3.bf16.msra.mxu1 %v758_v35 }
  0x4a   :  { %699 = vmatprep.subr.bf16.mxu1 %v759_v36 }
  0x4c   :  { %684 = vmatmul.mubr.msk.bf16.gmra.mxu1 %vm129_vm0, %v81_v34 }
  0x4d   :  { %700 = vmatpush3.bf16.msra.mxu1 %v759_v36 }
  0x4e   :  { %701 = vmatprep.subr.bf16.mxu1 %v760_v37 }
  0x51   :  { %702 = vmatpush3.bf16.msra.mxu1 %v760_v37 }
  0xf4   :  { %v673_v38 = vpop.f32.mrf.mxu1 }
  0xf5   :  { %v197_v42 = vadd.f32 %v673_v38, %v943_v39 }
  0xf6   :  { %v188_v40 = vpop.f32.mrf.mxu1 }
  0xf7   :  { %v189_v41 = vadd.f32 %v943_v39, %v188_v40  ;;  %v269_v49 = vmul.f32 0.2, %v197_v42  ;;  %vm253_vm3 = vcmp.ge.f32.partialorder %v197_v42, 0.0 }
  0xf8   :  { %v674_v43 = vpop.f32.mrf.mxu1 }
  0xf9   :  { %v200_v44 = vadd.f32 %v674_v43, %v943_v39  ;;  %v267_v46 = vmul.f32 0.2, %v189_v41  ;;  %vm251_vm2 = vcmp.ge.f32.partialorder %v189_v41, 0.0  ;;  %v285_v57 = vsel %vm253_vm3, %v197_v42, %v269_v49 }
  0xfa   :  { %v191_v45 = vpop.f32.mrf.mxu1  ;;  %v833_v49 = vmov 0  }
  0xfb   :  { %vm254_vm1 = vcmp.ge.f32.partialorder %v200_v44, 0.0  ;;  %v270_v47 = vmul.f32 0.2, %v200_v44  ;;  %v192_v48 = vadd.f32 %v943_v39, %v191_v45  ;;  %v283_v55 = vsel %vm251_vm2, %v189_v41, %v267_v46  ;;  %747 = vset.pattern.permute.xlu0 %v833_v49 }
  0xfc   :  { %v677_v50 = vpop.f32.mrf.mxu1 }
  0xfd   :  { %vm252_vm4 = vcmp.ge.f32.partialorder %v192_v48, 0.0  ;;  %v268_v51 = vmul.f32 0.2, %v192_v48  ;;  %v286_v52 = vsel %vm254_vm1, %v200_v44, %v270_v47  ;;  %v213_v58 = vadd.f32 %v677_v50, %v943_v39  ;;  %v966_v50 = vld [vmem:[%s1022_s4] ss:$0 sm:$0xff] }
  0xfe   :  { %v204_v53 = vpop.f32.mrf.mxu1  ;;  %v300_v61 = vpack.c.bf16 %v286_v52, %v285_v57  ;;  %vm832_vm1 = vmmov 0  }
  0xff   :  { %v205_v54 = vadd.f32 %v943_v39, %v204_v53  ;;  %v284_v56 = vsel %vm252_vm4, %v192_v48, %v268_v51  ;;  %v273_v3 = vmul.f32 0.2, %v213_v58  ;;  %vm257_vm7 = vcmp.ge.f32.partialorder %v213_v58, 0.0 }
 0x100   :  { %v678_v59 = vpop.f32.mrf.mxu1  ;;  %v299_v60 = vpack.c.bf16 %v284_v56, %v283_v55  ;;  %v831_v48 = vmov 0.0  }
 0x101   :  { %v216_v62 = vadd.f32 %v678_v59, %v943_v39  ;;  %v271_v0 = vmul.f32 0.2, %v205_v54  ;;  %vm255_vm6 = vcmp.ge.f32.partialorder %v205_v54, 0.0  ;;  %v289_v14 = vsel %vm257_vm7, %v213_v58, %v273_v3  ;;  %719 = vmatprep.subr.bf16.mxu0 %v831_v48  ;;  %735 = vmatprep.mubr.msk.bf16.mxu0 %vm832_vm1, %v831_v48 }
 0x102   :  { %v207_v63 = vpop.f32.mrf.mxu1  ;;  %703 = vmatprep.mubr.bf16.mxu1 %v299_v60 }
 0x103   :  { %vm258_vm5 = vcmp.ge.f32.partialorder %v216_v62, 0.0  ;;  %v274_v1 = vmul.f32 0.2, %v216_v62  ;;  %v208_v2 = vadd.f32 %v943_v39, %v207_v63  ;;  %704 = vmatmul.mubr.bf16.vlgmr.msra.gmra.mxu1 %v300_v61  ;;  %v287_v9 = vsel %vm255_vm6, %v205_v54, %v271_v0 }
 0x104   :  { %v681_v4 = vpop.f32.mrf.mxu1 }
 0x105   :  { %vm256_vm8 = vcmp.ge.f32.partialorder %v208_v2, 0.0  ;;  %v272_v5 = vmul.f32 0.2, %v208_v2  ;;  %v290_v7 = vsel %vm258_vm5, %v216_v62, %v274_v1  ;;  %v229_v11 = vadd.f32 %v681_v4, %v943_v39 }
 0x106   :  { %v220_v6 = vpop.f32.mrf.mxu1  ;;  %v302_v16 = vpack.c.bf16 %v290_v7, %v289_v14 }
 0x107   :  { %v221_v8 = vadd.f32 %v943_v39, %v220_v6  ;;  %v288_v10 = vsel %vm256_vm8, %v208_v2, %v272_v5  ;;  %v277_v21 = vmul.f32 0.2, %v229_v11  ;;  %vm261_vm11 = vcmp.ge.f32.partialorder %v229_v11, 0.0 }
 0x108   :  { %v682_v12 = vpop.f32.mrf.mxu1  ;;  %v301_v13 = vpack.c.bf16 %v288_v10, %v287_v9 }
 0x109   :  { %v232_v15 = vadd.f32 %v682_v12, %v943_v39  ;;  %v275_v18 = vmul.f32 0.2, %v221_v8  ;;  %vm259_vm10 = vcmp.ge.f32.partialorder %v221_v8, 0.0  ;;  %v293_v32 = vsel %vm261_vm11, %v229_v11, %v277_v21 }
 0x10a   :  { %v223_v17 = vpop.f32.mrf.mxu1  ;;  %707 = vmatprep.mubr.bf16.mxu1 %v301_v13 }
 0x10b   :  { %vm262_vm9 = vcmp.ge.f32.partialorder %v232_v15, 0.0  ;;  %v278_v19 = vmul.f32 0.2, %v232_v15  ;;  %v224_v20 = vadd.f32 %v943_v39, %v223_v17  ;;  %708 = vmatmul.mubr.bf16.gmra.mxu1 %v302_v16  ;;  %v291_v27 = vsel %vm259_vm10, %v221_v8, %v275_v18 }
 0x10c   :  { %v685_v22 = vpop.f32.mrf.mxu1 }
 0x10d   :  { %vm260_vm12 = vcmp.ge.f32.partialorder %v224_v20, 0.0  ;;  %v276_v23 = vmul.f32 0.2, %v224_v20  ;;  %v294_v25 = vsel %vm262_vm9, %v232_v15, %v278_v19  ;;  %v245_v29 = vadd.f32 %v685_v22, %v943_v39 }
 0x10e   :  { %v236_v24 = vpop.f32.mrf.mxu1  ;;  %v304_v34 = vpack.c.bf16 %v294_v25, %v293_v32 }
 0x10f   :  { %v237_v26 = vadd.f32 %v943_v39, %v236_v24  ;;  %v292_v28 = vsel %vm260_vm12, %v224_v20, %v276_v23  ;;  %v281_v40 = vmul.f32 0.2, %v245_v29  ;;  %vm265_vm15 = vcmp.ge.f32.partialorder %v245_v29, 0.0 }
 0x110   :  { %v686_v30 = vpop.f32.mrf.mxu1  ;;  %v303_v31 = vpack.c.bf16 %v292_v28, %v291_v27 }
 0x111   :  { %v248_v33 = vadd.f32 %v686_v30, %v943_v39  ;;  %v279_v36 = vmul.f32 0.2, %v237_v26  ;;  %vm263_vm14 = vcmp.ge.f32.partialorder %v237_v26, 0.0  ;;  %v297_v46 = vsel %vm265_vm15, %v245_v29, %v281_v40 }
 0x112   :  { %v239_v35 = vpop.f32.mrf.mxu1  ;;  %711 = vmatprep.mubr.bf16.mxu1 %v303_v31 }
 0x113   :  { %vm266_vm13 = vcmp.ge.f32.partialorder %v248_v33, 0.0  ;;  %v282_v37 = vmul.f32 0.2, %v248_v33  ;;  %v240_v38 = vadd.f32 %v943_v39, %v239_v35  ;;  %712 = vmatmul.mubr.bf16.gmra.mxu1 %v304_v34  ;;  %v295_v43 = vsel %vm263_vm14, %v237_v26, %v279_v36  ;;  %v532_v39 = vld [vmem:[#allocation2] sm:$0x1] }
 0x114   :  { %575 = vperm.xlu0 %747, %v532_v39  }
 0x115   :  { %vm264_vm0 = vcmp.ge.f32.partialorder %v240_v38, 0.0  ;;  %v280_v41 = vmul.f32 0.2, %v240_v38  ;;  %v298_v42 = vsel %vm266_vm13, %v248_v33, %v282_v37 }
 0x116   :  { %v306_v47 = vpack.c.bf16 %v298_v42, %v297_v46 }
 0x117   :  { %v296_v44 = vsel %vm264_vm0, %v240_v38, %v280_v41 }
 0x118   :  { %v305_v45 = vpack.c.bf16 %v296_v44, %v295_v43 }
 0x11a   :  { %715 = vmatprep.mubr.bf16.mxu1 %v305_v45 }
 0x11b   :  { %716 = vmatmul.mubr.bf16.gmra.mxu1 %v306_v47 }
 0x1c3   :  { %v705_v51 = vpop.f32.mrf.mxu1 }
 0x1c4   :  { %v421_v52 = vadd.f32 %v705_v51, %v966_v50 }
 0x1c5   :  { %v412_v53 = vpop.f32.mrf.mxu1 }
 0x1c6   :  { %v413_v54 = vadd.f32 %v966_v50, %v412_v53  ;;  %v493_v56 = vmul.f32 0.2, %v421_v52  ;;  %vm477_vm2 = vcmp.ge.f32.partialorder %v421_v52, 0.0 }
 0x1c7   :  { %v706_v55 = vpop.f32.mrf.mxu1 }
 0x1c8   :  { %v424_v57 = vadd.f32 %v706_v55, %v966_v50  ;;  %v491_v59 = vmul.f32 0.2, %v413_v54  ;;  %vm475_vm4 = vcmp.ge.f32.partialorder %v413_v54, 0.0  ;;  %v972_v0 = vsel %vm477_vm2, %v421_v52, %v493_v56 }
 0x1c9   :  { %v415_v58 = vpop.f32.mrf.mxu1 }
 0x1ca   :  { %vm478_vm3 = vcmp.ge.f32.partialorder %v424_v57, 0.0  ;;  %v494_v60 = vmul.f32 0.2, %v424_v57  ;;  %v416_v61 = vadd.f32 %v966_v50, %v415_v58  ;;  %v980_v4 = vsel %vm475_vm4, %v413_v54, %v491_v59 }
 0x1cb   :  { %v709_v62 = vpop.f32.mrf.mxu1 }
 0x1cc   :  { %vm476_vm5 = vcmp.ge.f32.partialorder %v416_v61, 0.0  ;;  %v492_v63 = vmul.f32 0.2, %v416_v61  ;;  %v974_v1 = vsel %vm478_vm3, %v424_v57, %v494_v60  ;;  %v437_v45 = vadd.f32 %v709_v62, %v966_v50 }
 0x1cd   :  { %v976_v2 = vpop.f32.mrf.mxu1  ;;  %v524_v3 = vpack.c.bf16 %v974_v1, %v972_v0 }
 0x1ce   :  { %v982_v5 = vsel %vm476_vm5, %v416_v61, %v492_v63  ;;  %v497_v49 = vmul.f32 0.2, %v437_v45  ;;  %vm481_vm15 = vcmp.ge.f32.partialorder %v437_v45, 0.0  ;;  %v429_v53 = vadd.f32 %v966_v50, %v976_v2  ;;  %v576_v2 = vpop.permute.xlu0 %575 }
 0x1cf   :  { %v710_v6 = vpop.f32.mrf.mxu1  ;;  %v523_v7 = vpack.c.bf16 %v982_v5, %v980_v4  ;;  %v578_v61 = vlaneseq }
 0x1d0   :  { %v440_v43 = vadd.f32 %v710_v6, %v966_v50  ;;  %v513_v54 = vsel %vm481_vm15, %v437_v45, %v497_v49  ;;  %v495_v57 = vmul.f32 0.2, %v429_v53  ;;  %vm479_vm1 = vcmp.ge.f32.partialorder %v429_v53, 0.0 }
 0x1d1   :  { %v431_v8 = vpop.f32.mrf.mxu1  ;;  %v579_v62 = vshrl.u32 %v578_v61, 7 }
 0x1d2   :  { %v498_v39 = vmul.f32 0.2, %v440_v43  ;;  %vm482_vm14 = vcmp.ge.f32.partialorder %v440_v43, 0.0  ;;  %v432_v51 = vadd.f32 %v966_v50, %v431_v8  ;;  %v511_v59 = vsel %vm479_vm1, %v429_v53, %v495_v57 }
 0x1d3   :  { %v713_v9 = vpop.f32.mrf.mxu1  ;;  %v580_v63 = vsub.s32 0, %v579_v62 }
 0x1d4   :  { %v453_v30 = vadd.f32 %v713_v9, %v966_v50  ;;  %v514_v52 = vsel %vm482_vm14, %v440_v43, %v498_v39  ;;  %v496_v56 = vmul.f32 0.2, %v432_v51  ;;  %vm480_vm0 = vcmp.ge.f32.partialorder %v432_v51, 0.0 }
 0x1d5   :  { %v444_v10 = vpop.f32.mrf.mxu1  ;;  %v526_v55 = vpack.c.bf16 %v514_v52, %v513_v54  ;;  %v581_v6 = vrot.slane %v576_v2, %v580_v63 }
 0x1d6   :  { %v501_v34 = vmul.f32 0.2, %v453_v30  ;;  %vm485_vm11 = vcmp.ge.f32.partialorder %v453_v30, 0.0  ;;  %v445_v37 = vadd.f32 %v966_v50, %v444_v10  ;;  %v512_v58 = vsel %vm480_vm0, %v432_v51, %v496_v56 }
 0x1d7   :  { %v714_v11 = vpop.f32.mrf.mxu1  ;;  %v525_v60 = vpack.c.bf16 %v512_v58, %v511_v59 }
 0x1d8   :  { %v456_v28 = vadd.f32 %v714_v11, %v966_v50  ;;  %v517_v38 = vsel %vm485_vm11, %v453_v30, %v501_v34  ;;  %v499_v42 = vmul.f32 0.2, %v445_v37  ;;  %vm483_vm13 = vcmp.ge.f32.partialorder %v445_v37, 0.0 }
 0x1d9   :  { %v447_v12 = vpop.f32.mrf.mxu1 }
 0x1da   :  { %v502_v33 = vmul.f32 0.2, %v456_v28  ;;  %vm486_vm10 = vcmp.ge.f32.partialorder %v456_v28, 0.0  ;;  %v448_v35 = vadd.f32 %v966_v50, %v447_v12  ;;  %v515_v46 = vsel %vm483_vm13, %v445_v37, %v499_v42 }
 0x1db   :  { %v717_v13 = vpop.f32.mrf.mxu1 }
 0x1dc   :  { %v469_v14 = vadd.f32 %v717_v13, %v966_v50  ;;  %v518_v36 = vsel %vm486_vm10, %v456_v28, %v502_v33  ;;  %v500_v41 = vmul.f32 0.2, %v448_v35  ;;  %vm484_vm12 = vcmp.ge.f32.partialorder %v448_v35, 0.0 }
 0x1dd   :  { %v460_v15 = vpop.f32.mrf.mxu1  ;;  %v528_v40 = vpack.c.bf16 %v518_v36, %v517_v38 }
 0x1de   :  { %v505_v17 = vmul.f32 0.2, %v469_v14  ;;  %vm489_vm6 = vcmp.ge.f32.partialorder %v469_v14, 0.0  ;;  %v461_v22 = vadd.f32 %v966_v50, %v460_v15  ;;  %v516_v44 = vsel %vm484_vm12, %v448_v35, %v500_v41 }
 0x1df   :  { %v718_v16 = vpop.f32.mrf.mxu1  ;;  %v527_v47 = vpack.c.bf16 %v516_v44, %v515_v46 }
 0x1e0   :  { %v472_v18 = vadd.f32 %v718_v16, %v966_v50  ;;  %v521_v23 = vsel %vm489_vm6, %v469_v14, %v505_v17  ;;  %v503_v27 = vmul.f32 0.2, %v461_v22  ;;  %vm487_vm9 = vcmp.ge.f32.partialorder %v461_v22, 0.0 }
 0x1e1   :  { %v463_v19 = vpop.f32.mrf.mxu1 }
 0x1e2   :  { %v506_v20 = vmul.f32 0.2, %v472_v18  ;;  %v464_v21 = vadd.f32 %v966_v50, %v463_v19  ;;  %vm490_vm7 = vcmp.ge.f32.partialorder %v472_v18, 0.0  ;;  %v519_v31 = vsel %vm487_vm9, %v461_v22, %v503_v27  ;;  %v531_v50 = vld [vmem:[%s1023_s5] sm:$0xf] }
 0x1e4   :  { %v522_v24 = vsel %vm490_vm7, %v472_v18, %v506_v20  ;;  %v504_v26 = vmul.f32 0.2, %v464_v21  ;;  %vm488_vm8 = vcmp.ge.f32.partialorder %v464_v21, 0.0 }
 0x1e5   :  { %v530_v25 = vpack.c.bf16 %v522_v24, %v521_v23 }
 0x1e6   :  { %v520_v29 = vsel %vm488_vm8, %v464_v21, %v504_v26 }
 0x1e7   :  { %720 = vmatpush3.bf16.xpose.msra.mxu0 %v530_v25  ;;  %v529_v32 = vpack.c.bf16 %v520_v29, %v519_v31 }
 0x1e8   :  { %721 = vmatprep.subr.bf16.mxu0 %v831_v48 }
 0x1ef   :  { %722 = vmatpush3.bf16.xpose.msra.mxu0 %v529_v32 }
 0x1f0   :  { %723 = vmatprep.subr.bf16.mxu0 %v831_v48 }
 0x1f7   :  { %724 = vmatpush3.bf16.xpose.msra.mxu0 %v528_v40 }
 0x1f8   :  { %725 = vmatprep.subr.bf16.mxu0 %v831_v48 }
 0x1ff   :  { %726 = vmatpush3.bf16.xpose.msra.mxu0 %v527_v47 }
 0x200   :  { %727 = vmatprep.subr.bf16.mxu0 %v831_v48 }
 0x207   :  { %728 = vmatpush3.bf16.xpose.msra.mxu0 %v526_v55 }
 0x208   :  { %729 = vmatprep.subr.bf16.mxu0 %v831_v48 }
 0x20f   :  { %730 = vmatpush3.bf16.xpose.msra.mxu0 %v525_v60 }
 0x210   :  { %731 = vmatprep.subr.bf16.mxu0 %v831_v48 }
 0x217   :  { %732 = vmatpush3.bf16.xpose.msra.mxu0 %v524_v3 }
 0x218   :  { %733 = vmatprep.subr.bf16.mxu0 %v831_v48 }
 0x21f   :  { %734 = vmatpush3.bf16.xpose.msra.mxu0 %v523_v7 }
 0x226   :  { %736 = vmatmul.mubr.bf16.vlgmr.msra.gmra.mxu0 %v531_v50 }
 0x2e6   :  { %v567_v0 = vpop.f32.mrf.mxu0 }
 0x2e7   :  { %v582_v1 = vadd.f32 %v581_v6, %v567_v0 }
 0x2e8   :  { %v737_v48 = vpop.f32.mrf.mxu0 }
 0x2e9   :  { %583 = vst [vmem:[#allocation8] sm:$0x1] %v582_v1 }
 0x2ea   :  { %v570_v3 = vpop.f32.mrf.mxu0 }
 0x2eb   :  { %812 = shalt.err (!%p809_p0)
}
 0x2ec   :  { %593 = dma.vmem_to_hbm [thread:$0]  %s591_s22, 16, %s1025_s7, [#allocation5]   ;;  %v738_v4 = vpop.f32.mrf.mxu0 }
 0x2ed   :  { %825 = dma.done.wait [#allocation5], 16  }
 0x2ee   :  { %826 = vsyncadd [#allocation5], 4294967280 }
 0x2ef   :  { %597 = vsyncpa [#allocation4], 1 }
 0x2f0   :  { %598 = vsyncpa [#allocation7], 1 }
 0x2f1   :  { %599 = vsyncpa [#allocation5], 1 }

</bundles_post_ra>
